<compile_context>
chip_gen: v5e
topology: v5e:2x2
jax: 0.10.0
libtpu: 0.0.40
codegen_flags: <defaults>
</compile_context>

<pallas_src>
import functools
import math

import jax
import jax.numpy as jnp
from jax.experimental import pallas as pl
from jax.experimental.pallas import tpu as pltpu


# Below v7x's 64 MiB physical VMEM, above the 32 MiB scoped default on v6e/v7x.
_VMEM_LIMIT = 48 * 1024 * 1024


def _pick_tile(n, multiple, cap):
    """Largest multiple of `multiple` that divides n and is <= cap; else the full dim."""
    if n % multiple != 0:
        return n
    t = (min(n, cap) // multiple) * multiple
    while t >= multiple:
        if n % t == 0:
            return t
        t -= multiple
    return n


# ---------------------------------------------------------------------------
# Kernel 1: tiled dense linear  y = x @ W + b  (bf16 MXU inputs, f32 accumulate)
# ---------------------------------------------------------------------------
def _linear_kernel(x_ref, w_ref, b_ref, o_ref, acc_ref):
    k = pl.program_id(2)

    @pl.when(k == 0)
    def _():
        acc_ref[...] = jnp.zeros_like(acc_ref)

    acc_ref[...] += jnp.dot(
        x_ref[...].astype(jnp.bfloat16),
        w_ref[...].astype(jnp.bfloat16),
        preferred_element_type=jnp.float32,
    )

    @pl.when(k == pl.num_programs(2) - 1)
    def _():
        o_ref[...] = (acc_ref[...] + b_ref[...]).astype(o_ref.dtype)


def linear(x, w, b):
    """x: (M, K), w: (K, N), b: (1, N) -> (M, N) float32."""
    M, K = x.shape
    N = w.shape[1]
    tm = _pick_tile(M, 8, 256)     # second-minor dim: multiple of 8 (or full dim)
    tn = _pick_tile(N, 128, 512)   # minor dim: multiple of 128 (256+ preferred on v6e/v7x)
    tk = _pick_tile(K, 128, 512)
    grid = (M // tm, N // tn, K // tk)
    return pl.pallas_call(
        _linear_kernel,
        out_shape=jax.ShapeDtypeStruct((M, N), jnp.float32),
        grid=grid,
        in_specs=[
            pl.BlockSpec((tm, tk), lambda i, j, k: (i, k)),
            pl.BlockSpec((tk, tn), lambda i, j, k: (k, j)),
            pl.BlockSpec((1, tn), lambda i, j, k: (0, j)),
        ],
        out_specs=pl.BlockSpec((tm, tn), lambda i, j, k: (i, j)),
        scratch_shapes=[pltpu.VMEM((tm, tn), jnp.float32)],
        compiler_params=pltpu.CompilerParams(
            dimension_semantics=("parallel", "parallel", "arbitrary"),
            vmem_limit_bytes=_VMEM_LIMIT,
        ),
    )(x, w, b)


# ---------------------------------------------------------------------------
# Kernel 2: scaled-dot-product attention, all heads of one batch per grid step
# ---------------------------------------------------------------------------
def _attn_kernel(q_ref, k_ref, v_ref, m_ref, o_ref, p_ref=None, *, h, d_k):
    q = q_ref[0]        # (Sq, H*d_k) f32, merged-head (lane-dense) layout
    k = k_ref[0]        # (Sk, H*d_k)
    v = v_ref[0]        # (Sk, H*d_k)
    mask = m_ref[0]     # (Sq, Sk) f32; 0 => masked

    scale = jnp.float32(1.0 / math.sqrt(d_k))
    masked = mask == 0.0                      # mask loaded once, shared by all heads
    ctx = []
    for hh in range(h):                       # static unroll over heads
        sl = slice(hh * d_k, (hh + 1) * d_k)
        qh = (q[:, sl] * scale).astype(jnp.bfloat16)   # pre-scale q (Sq*d_k mults)
        kh = k[:, sl].astype(jnp.bfloat16)
        vh = v[:, sl].astype(jnp.bfloat16)
        # scores: contract the last dims directly (no explicit k.T / XLU transpose)
        s = jax.lax.dot_general(
            qh, kh, (((1,), (1,)), ((), ())),
            preferred_element_type=jnp.float32)         # (Sq, Sk) f32
        s = jnp.where(masked, jnp.float32(-1e9), s)     # masked_fill(mask == 0, -1e9)
        s = s - jnp.max(s, axis=-1, keepdims=True)      # softmax kept in f32
        e = jnp.exp(s)
        p = e * pl.reciprocal(jnp.sum(e, axis=-1, keepdims=True), approx=True)
        if p_ref is not None:
            p_ref[0, hh] = p
        ctx.append(jnp.dot(p.astype(jnp.bfloat16), vh,
                           preferred_element_type=jnp.float32))
    # Lane-dense merged-head context (Sq, H*d_k): matches PyTorch transpose+view.
    o_ref[0] = jnp.concatenate(ctx, axis=-1)


def attention_core(q, k, v, mask, h, return_attn=False):
    """q: (B, Sq, D), k/v: (B, Sk, D) merged-head layout; mask: (B, Sq, Sk) f32.
    Returns ctx (B, Sq, D) [, p_attn (B, h, Sq, Sk) if return_attn]."""
    B, Sq, D = q.shape
    Sk = k.shape[1]
    d_k = D // h

    in_specs = [
        pl.BlockSpec((1, Sq, D), lambda b: (b, 0, 0)),
        pl.BlockSpec((1, Sk, D), lambda b: (b, 0, 0)),
        pl.BlockSpec((1, Sk, D), lambda b: (b, 0, 0)),
        pl.BlockSpec((1, Sq, Sk), lambda b: (b, 0, 0)),
    ]
    if return_attn:
        out_shape = (
            jax.ShapeDtypeStruct((B, Sq, D), jnp.float32),
            jax.ShapeDtypeStruct((B, h, Sq, Sk), jnp.float32),
        )
        out_specs = (
            pl.BlockSpec((1, Sq, D), lambda b: (b, 0, 0)),
            pl.BlockSpec((1, h, Sq, Sk), lambda b: (b, 0, 0, 0)),
        )
    else:
        out_shape = jax.ShapeDtypeStruct((B, Sq, D), jnp.float32)
        out_specs = pl.BlockSpec((1, Sq, D), lambda b: (b, 0, 0))

    return pl.pallas_call(
        functools.partial(_attn_kernel, h=h, d_k=d_k),
        out_shape=out_shape,
        grid=(B,),
        in_specs=in_specs,
        out_specs=out_specs,
        compiler_params=pltpu.CompilerParams(
            dimension_semantics=("parallel",),   # batch axis -> megacore on v7x
            vmem_limit_bytes=_VMEM_LIMIT,
        ),
    )(q, k, v, mask)


# ---------------------------------------------------------------------------
# MultiHeadedAttention module (parameters built deterministically in-script)
# ---------------------------------------------------------------------------
class MultiHeadedAttention:
    def __init__(self, h, d_model, rng_key):
        assert d_model % h == 0
        self.h = h
        self.d_k = d_model // h
        self.d_model = d_model
        bound = 1.0 / math.sqrt(d_model)      # nn.Linear-style uniform init
        keys = jax.random.split(rng_key, 8)
        self.weights, self.biases = [], []    # stored as (in, out) so y = x @ W + b
        for i in range(4):
            self.weights.append(jax.random.uniform(
                keys[2 * i], (d_model, d_model), jnp.float32, -bound, bound))
            self.biases.append(jax.random.uniform(
                keys[2 * i + 1], (1, d_model), jnp.float32, -bound, bound))
        # Fused projection weights: one matmul instead of three (self-attention),
        # or one instead of two for the shared key/value input (cross-attention).
        self.w_qkv = jnp.concatenate(self.weights[:3], axis=1)   # (D, 3D)
        self.b_qkv = jnp.concatenate(self.biases[:3], axis=1)    # (1, 3D)
        self.w_kv = jnp.concatenate(self.weights[1:3], axis=1)   # (D, 2D)
        self.b_kv = jnp.concatenate(self.biases[1:3], axis=1)    # (1, 2D)
        self.attn = None

    def __call__(self, query, key, value, mask=None, return_attn=False):
        B, Sq, D = query.shape
        Sk = key.shape[1]
        h = self.h

        if query is key and key is value:          # self-attention: fused QKV matmul
            qkv = linear(query.reshape(B * Sq, D), self.w_qkv, self.b_qkv)
            qkv = qkv.reshape(B, Sq, 3 * D)
            q, k, v = qkv[..., :D], qkv[..., D:2 * D], qkv[..., 2 * D:]
        elif key is value:                         # cross-attention: fused KV matmul
            q = linear(query.reshape(B * Sq, D), self.weights[0], self.biases[0]
                       ).reshape(B, Sq, D)
            kv = linear(key.reshape(B * Sk, D), self.w_kv, self.b_kv
                        ).reshape(B, Sk, 2 * D)
            k, v = kv[..., :D], kv[..., D:]
        else:                                      # fully general fallback
            q = linear(query.reshape(B * Sq, D), self.weights[0], self.biases[0]
                       ).reshape(B, Sq, D)
            k = linear(key.reshape(B * Sk, D), self.weights[1], self.biases[1]
                       ).reshape(B, Sk, D)
            v = linear(value.reshape(B * Sk, D), self.weights[2], self.biases[2]
                       ).reshape(B, Sk, D)

        if mask is None:
            mask3 = jnp.ones((B, Sq, Sk), jnp.float32)
        else:
            # PyTorch mask.unsqueeze(1) broadcast: accepts (B, Sq, Sk) or (B, 1, Sk).
            mask3 = jnp.broadcast_to(jnp.asarray(mask, jnp.float32), (B, Sq, Sk))

        if return_attn:
            ctx, self.attn = attention_core(q, k, v, mask3, h, return_attn=True)
        else:
            ctx = attention_core(q, k, v, mask3, h, return_attn=False)
            self.attn = None   # p_attn intentionally not materialized (saves O(S^2) HBM stores)

        # ctx is already (B, Sq, h*d_k) merged-head -> no transpose needed.
        out = linear(ctx.reshape(B * Sq, D), self.weights[3], self.biases[3])
        return out.reshape(B, Sq, self.d_model)


def _reference_forward(mha, query, key, value, mask):
    """Pure-JAX f32 reference of the PyTorch forward (eval mode) for a sanity check."""
    B, Sq, D = query.shape
    h, dk = mha.h, mha.d_k
    lin = lambda x, w, b: x @ w + b
    q = lin(query, mha.weights[0], mha.biases[0]).reshape(B, Sq, h, dk).transpose(0, 2, 1, 3)
    k = lin(key, mha.weights[1], mha.biases[1]).reshape(B, -1, h, dk).transpose(0, 2, 1, 3)
    v = lin(value, mha.weights[2], mha.biases[2]).reshape(B, -1, h, dk).transpose(0, 2, 1, 3)
    s = jnp.einsum("bhqd,bhkd->bhqk", q, k) / math.sqrt(dk)
    s = jnp.where(mask[:, None, :, :] == 0.0, -1e9, s)
    p = jax.nn.softmax(s, axis=-1)
    ctx = jnp.einsum("bhqk,bhkd->bhqd", p, v).transpose(0, 2, 1, 3).reshape(B, Sq, D)
    return lin(ctx, mha.weights[3], mha.biases[3])


if __name__ == "__main__":
    B, S, H, D = 2, 8, 4, 32  # d_k = 8

    root = jax.random.PRNGKey(0)
    k_param, k_x, k_m = jax.random.split(root, 3)

    mha = MultiHeadedAttention(H, D, k_param)

    x = jax.random.normal(k_x, (B, S, D), jnp.float32)
    # binary mask (B, Sq, Sk); 0 entries get -1e9 before softmax
    mask = (jax.random.uniform(k_m, (B, S, S)) > 0.2).astype(jnp.float32)

    out = mha(x, x, x, mask=mask)            # self-attention -> fused QKV path
    jax.block_until_ready(out)
    assert out.shape == (B, S, D)

    # loose tolerance: kernel uses bf16 MXU inputs + approx reciprocal
    ref = _reference_forward(mha, x, x, x, mask)
    max_err = float(jnp.max(jnp.abs(out - ref)))
    assert max_err < 5e-2, f"mismatch vs reference: {max_err}"

    print("KERNEL_OK")
</pallas_src>

<mosaic_0001>
module attributes {stable_mosaic.version = 11 : i64} {
  func.func @_linear_kernel(%arg0: i32, %arg1: i32, %arg2: i32, %arg3: memref<16x32xf32, #tpu.memory_space<vmem>>, %arg4: memref<32x96xf32, #tpu.memory_space<vmem>>, %arg5: memref<1x96xf32, #tpu.memory_space<vmem>>, %arg6: memref<16x96xf32, #tpu.memory_space<vmem>>, %arg7: memref<16x96xf32, #tpu.memory_space<vmem>>) attributes {dimension_semantics = [#tpu.dimension_semantics<parallel>, #tpu.dimension_semantics<parallel>, #tpu.dimension_semantics<arbitrary>], iteration_bounds = array<i64: 1, 1, 1>, scalar_prefetch = 0 : i64, scratch_operands = 1 : i64, tpu.core_type = #tpu.core_type<tc>, window_params = [{transform_indices = @transform_0, window_bounds = array<i64: 16, 32>}, {transform_indices = @transform_1, window_bounds = array<i64: 32, 96>}, {transform_indices = @transform_2, window_bounds = array<i64: 1, 96>}, {transform_indices = @transform_3, window_bounds = array<i64: 16, 96>}]} {
    %c0_i32 = arith.constant 0 : i32
    %0 = arith.cmpi eq, %arg2, %c0_i32 : i32
    %1 = arith.extui %0 : i1 to i32
    %c0_i32_0 = arith.constant 0 : i32
    %2 = arith.cmpi ne, %1, %c0_i32_0 : i32
    scf.if %2 {
      %cst_10 = arith.constant 0.000000e+00 : f32
      %14 = vector.broadcast %cst_10 : f32 to vector<16x96xf32>
      %c0_11 = arith.constant 0 : index
      %c0_12 = arith.constant 0 : index
      %15 = vector.load %arg7[%c0_11, %c0_12] : memref<16x96xf32, #tpu.memory_space<vmem>>, vector<16x96xf32>
      tpu.vector_store %arg7[%c0_11, %c0_12], %14 {strides = array<i32>} : memref<16x96xf32, #tpu.memory_space<vmem>>, vector<16x96xf32>,
    } else {
    }
    %c0 = arith.constant 0 : index
    %c0_1 = arith.constant 0 : index
    %3 = vector.load %arg7[%c0, %c0_1] : memref<16x96xf32, #tpu.memory_space<vmem>>, vector<16x96xf32>
    %c0_2 = arith.constant 0 : index
    %c0_3 = arith.constant 0 : index
    %4 = vector.load %arg3[%c0_2, %c0_3] : memref<16x32xf32, #tpu.memory_space<vmem>>, vector<16x32xf32>
    %5 = arith.truncf %4 : vector<16x32xf32> to vector<16x32xbf16>
    %c0_4 = arith.constant 0 : index
    %c0_5 = arith.constant 0 : index
    %6 = vector.load %arg4[%c0_4, %c0_5] : memref<32x96xf32, #tpu.memory_space<vmem>>, vector<32x96xf32>
    %7 = arith.truncf %6 : vector<32x96xf32> to vector<32x96xbf16>
    %cst = arith.constant dense<0.000000e+00> : vector<16x96xf32>
    %8 = tpu.matmul %5, %7, %cst {dimension_numbers = #tpu.dot_dimension_numbers<[1], [0], [0], [1], [0, 0, 1, 1], [], []>} : vector<16x32xbf16>, vector<32x96xbf16>, vector<16x96xf32> -> vector<16x96xf32>
    %9 = arith.addf %3, %8 : vector<16x96xf32>
    %c0_6 = arith.constant 0 : index
    %c0_7 = arith.constant 0 : index
    %10 = vector.load %arg7[%c0_6, %c0_7] : memref<16x96xf32, #tpu.memory_space<vmem>>, vector<16x96xf32>
    tpu.vector_store %arg7[%c0_6, %c0_7], %9 {strides = array<i32>} : memref<16x96xf32, #tpu.memory_space<vmem>>, vector<16x96xf32>,
    %c0_i32_8 = arith.constant 0 : i32
    %11 = arith.cmpi eq, %arg2, %c0_i32_8 : i32
    %12 = arith.extui %11 : i1 to i32
    %c0_i32_9 = arith.constant 0 : i32
    %13 = arith.cmpi ne, %12, %c0_i32_9 : i32
    scf.if %13 {
      %c0_10 = arith.constant 0 : index
      %c0_11 = arith.constant 0 : index
      %14 = vector.load %arg7[%c0_10, %c0_11] : memref<16x96xf32, #tpu.memory_space<vmem>>, vector<16x96xf32>
      %c0_12 = arith.constant 0 : index
      %c0_13 = arith.constant 0 : index
      %15 = vector.load %arg5[%c0_12, %c0_13] : memref<1x96xf32, #tpu.memory_space<vmem>>, vector<1x96xf32>
      %16 = vector.broadcast %15 : vector<1x96xf32> to vector<16x96xf32>
      %17 = arith.addf %14, %16 : vector<16x96xf32>
      %c0_14 = arith.constant 0 : index
      %c0_15 = arith.constant 0 : index
      %18 = vector.load %arg6[%c0_14, %c0_15] : memref<16x96xf32, #tpu.memory_space<vmem>>, vector<16x96xf32>
      tpu.vector_store %arg6[%c0_14, %c0_15], %17 {strides = array<i32>} : memref<16x96xf32, #tpu.memory_space<vmem>>, vector<16x96xf32>,
    } else {
    }
    return
  }
  func.func @transform_0(%arg0: i32, %arg1: i32, %arg2: i32) -> (i32, i32) {
    %c0_i32 = arith.constant 0 : i32
    return %arg0, %arg2 : i32, i32
  }
  func.func @transform_1(%arg0: i32, %arg1: i32, %arg2: i32) -> (i32, i32) {
    %c0_i32 = arith.constant 0 : i32
    return %arg2, %arg1 : i32, i32
  }
  func.func @transform_2(%arg0: i32, %arg1: i32, %arg2: i32) -> (i32, i32) {
    %c0_i32 = arith.constant 0 : i32
    %c0_i32_0 = arith.constant 0 : i32
    return %c0_i32, %arg1 : i32, i32
  }
  func.func @transform_3(%arg0: i32, %arg1: i32, %arg2: i32) -> (i32, i32) {
    %c0_i32 = arith.constant 0 : i32
    return %arg0, %arg1 : i32, i32
  }
}

</mosaic_0001>

<bundles_post_ra>
// kernel: tpu_custom_call.1
= control target key start
LH: loop header
LB: loop body
LE: loop exit
PB: predicated region body
PF: predicated region fallthrough
CT: control target
= control target key end

     0   :  { %8 = vsyncpa [#allocation4], 0  ;;  %s261_s0 = inlined_call_operand.hbm [shape: f32[16,32], index: 0, kind: input, shape index: {}]   ;;  %s262_s1 = inlined_call_operand.hbm [shape: f32[32,96], index: 1, kind: input, shape index: {}]   ;;  %s263_s2 = inlined_call_operand.vmem [shape: f32[1,96], index: 2, kind: input, shape index: {}]   ;;  %s264_s3 = inlined_call_operand.hbm [shape: f32[16,96], index: 3, kind: output, shape index: {}]  }
   0x1   :  { %9 = vsyncpa [#allocation7], 0 }
   0x2   :  { %10 = vsyncpa [#allocation5], 0  ;;  %s15_s14 = sshll.u32 %s261_s0, 4  ;;  %s208_s15 = smov [#allocation3]   ;;  %s16_s14 = int_to_ptr.hbm [resolvable:$true] %s15_s14 }
   0x3   :  { %s17_s16 = sshll.u32 %s208_s15, 4  ;;  %s28_s19 = sshll.u32 %s262_s1, 4  ;;  %s18_s16 = int_to_ptr.vmem [resolvable:$true] %s17_s16  ;;  %s29_s19 = int_to_ptr.hbm [resolvable:$true] %s28_s19 }
   0x4   :  { %s209_s20 = smov 128   ;;  %s210_s21 = smov 8  }
   0x5   :  { %23 = dma.hbm_to_vmem [thread:$0]  %s16_s14, 256, %s18_s16, [#allocation4], %s209_s20, %s209_s20, %s210_s21  }
   0x6   :  { %s211_s22 = smov [#allocation6]  }
   0x7   :  { %s30_s23 = sshll.u32 %s211_s22, 4  ;;  %s31_s23 = int_to_ptr.vmem [resolvable:$true] %s30_s23 }
   0x8   :  { %36 = dma.hbm_to_vmem [thread:$0]  %s29_s19, 512, %s31_s23, [#allocation7], %s209_s20, %s209_s20, %s210_s21  }
   0x9   :  { %202 = dma.done.wait [#allocation4], 256  }
   0xa   :  { %203 = vsyncadd [#allocation4], 4294967040 }
   0xb   :  { %204 = dma.done.wait [#allocation7], 512  }
   0xc   :  { %205 = vsyncadd [#allocation7], 4294966784  ;;  %vm52_vm0 = vcmask 785408   ;;  %v212_v0 = vmov 0.0   ;;  %v62_v1 = vld [vmem:[#allocation6 + $0x10] sm:$0xff]  ;;  %v63_v2 = vld [vmem:[#allocation6 + $0x18] sm:$0xff] }
   0xd   :  { %53 = vst.msk [vmem:[#allocation2] sm:$0xff] %vm52_vm0, %v212_v0  ;;  %v60_v3 = vld [vmem:[#allocation6] sm:$0xff]  ;;  %v65_v4 = vpack.c.bf16 %v63_v2, %v62_v1  ;;  %v61_v5 = vld [vmem:[#allocation6 + $0x8] sm:$0xff]  ;;  %v57_v7 = vld [vmem:[#allocation3] sm:$0xff]  ;;  %vm66_vm1 = vcmask 261120   ;;  %s213_s24 = smov [#allocation8]  }
   0xe   :  { %54 = vst.msk [vmem:[#allocation2 + $0x8] sm:$0xff] %vm52_vm0, %v212_v0  ;;  %v64_v6 = vpack.c.bf16 %v61_v5, %v60_v3  ;;  %v58_v8 = vld [vmem:[#allocation3 + $0x8] sm:$0xff]  ;;  %v129_v14 = vld [vmem:[%s263_s2] ss:$0 sm:$0xff]  ;;  %s106_s25 = sshll.u32 %s213_s24, 4  ;;  %s108_s28 = sshll.u32 %s264_s3, 4  ;;  %s107_s25 = int_to_ptr.vmem [resolvable:$true] %s106_s25  ;;  %s109_s28 = int_to_ptr.hbm [resolvable:$true] %s108_s28 }
   0xf   :  { %76 = vmatpush.bf16.msra.mxu0 %v65_v4  ;;  %v59_v9 = vpack.c.bf16 %v58_v8, %v57_v7 }
  0x13   :  { %77 = vmatpush.bf16.msra.mxu0 %v64_v6 }
  0x14   :  { %v55_v10 = vld [vmem:[#allocation2] sm:$0xff] }
  0x15   :  { %v56_v13 = vld [vmem:[#allocation2 + $0x8] sm:$0xff] }
  0x16   :  { %122 = vmatmul.msk.bf16.vlgmr.msra.gmra.mxu0 %vm66_vm1, %v59_v9 }
  0x93   :  { %v79_v11 = vpop.f32.mrf.mxu0 }
  0x94   :  { %v84_v12 = vadd.f32 %v79_v11, %v55_v10 }
  0x96   :  { %87 = vst.msk [vmem:[#allocation2] sm:$0xff] %vm52_vm0, %v84_v12 }
  0x9b   :  { %v81_v15 = vpop.f32.mrf.mxu0 }
  0x9c   :  { %v85_v16 = vadd.f32 %v81_v15, %v56_v13 }
  0x9d   :  { %v92_v17 = vld [vmem:[#allocation2] sm:$0xff] }
  0x9e   :  { %88 = vst.msk [vmem:[#allocation2 + $0x8] sm:$0xff] %vm52_vm0, %v85_v16  ;;  %v98_v18 = vadd.f32 %v129_v14, %v92_v17 }
  0xa0   :  { %100 = vst.msk [vmem:[#allocation8] sm:$0xff] %vm52_vm0, %v98_v18 }
  0xa5   :  { %v93_v19 = vld [vmem:[#allocation2 + $0x8] sm:$0xff] }
  0xa6   :  { %v99_v20 = vadd.f32 %v129_v14, %v93_v19 }
  0xa8   :  { %101 = vst.msk [vmem:[#allocation8 + $0x8] sm:$0xff] %vm52_vm0, %v99_v20 }
  0xa9   :  { %114 = dma.vmem_to_hbm [thread:$0]  %s107_s25, 256, %s109_s28, [#allocation5], %s209_s20, %s209_s20, %s210_s21  }
  0xaa   :  { %206 = dma.done.wait [#allocation5], 256  }
  0xab   :  { %207 = vsyncadd [#allocation5], 4294967040 }
  0xac   :  { %119 = vsyncpa [#allocation4], 1 }
  0xad   :  { %120 = vsyncpa [#allocation7], 1 }
  0xae   :  { %121 = vsyncpa [#allocation5], 1 }

</bundles_post_ra>
